<compile_context>
chip_gen: v5e
topology: v5e:2x2
jax: 0.10.0
libtpu: 0.0.40
codegen_flags: <defaults>
</compile_context>

<pallas_src>
import functools

import jax
import jax.numpy as jnp
from jax.experimental import pallas as pl
from jax.experimental.pallas import tpu as pltpu


# ----------------------------------------------------------------------------
# Kernel
# ----------------------------------------------------------------------------
def _base_model_kernel(x_ref, w_ref, b_ref, o_ref, *, final_activation,
                       batch_block):
    # x_ref: (Bb, Cin, T)   activations, spatial on lanes (input dtype)
    # w_ref: (Cout, Cin)    1x1-conv weight, resident (input dtype)
    # b_ref: (Cout, 1)      bias (f32)
    # o_ref: (Bb, Cout, T)  output block (lane-dense)
    w = w_ref[...]           # keep in input dtype: MXU is bf16-native
    b = b_ref[...]           # f32

    for bi in range(batch_block):            # small static unroll
        x = x_ref[bi]                        # (Cin, T), no f32 upcast
        # 1x1 conv == per-pixel linear; channels are the contraction dim.
        y = jnp.dot(w, x, preferred_element_type=jnp.float32) + b   # (Cout,T) f32

        if final_activation == "softmax":
            # softmax over channels (PyTorch dim=1 in NCHW == sublane axis)
            m = jnp.max(y, axis=0, keepdims=True)
            e = jnp.exp(y - m)
            y = e / jnp.sum(e, axis=0, keepdims=True)   # exact normalization
        elif final_activation == "sigmoid":
            y = jax.nn.sigmoid(y)
        # final_activation is None -> identity

        o_ref[bi] = y.astype(o_ref.dtype)


# ----------------------------------------------------------------------------
# Tiling helpers (generation-aware)
# ----------------------------------------------------------------------------
def _physical_vmem_bytes():
    """Per-TensorCore VMEM capacity; conservative fallback = v7x's 64 MiB."""
    try:
        info = pltpu.get_tpu_info()
        cap = getattr(info, "vmem_capacity_bytes", None)
        if cap:
            return int(cap)
    except Exception:
        pass
    return 64 * 1024 * 1024


def _cdiv(a, b):
    return -(-a // b)


def _pick_tile_hw(hw, batch, per_lane_bytes, budget_bytes, max_tile):
    """Largest lane tile whose double-buffered blocks + f32 intermediates fit
    the VMEM budget.  Guarantees >=2 grid steps when B==1 (v7x dual-TC)."""
    t = (budget_bytes // per_lane_bytes) // 128 * 128
    t = max(128, min(max_tile, t))
    if hw <= t:
        if batch == 1 and hw > 128:
            # Split spatial so both v7x TensorCores get a grid step.
            half = _cdiv(_cdiv(hw, 2), 128) * 128
            if half < hw:
                return max(128, half)
        return hw            # full-extent lane tile (layout-legal)
    return t                 # multiple of 128; ragged last block masked by Pallas


def _pick_batch_block(batch, n_hw, per_image_bytes, budget_bytes):
    """When the spatial tile already covers HW, amortize per-step overhead by
    blocking several images per grid step (keeps >=2 grid steps when B>=2)."""
    if n_hw != 1 or batch == 1:
        return 1
    best = 1
    for bb in range(1, min(batch, 8) + 1):     # small cap: static unroll in kernel
        if batch % bb:
            continue
        if bb * per_image_bytes > budget_bytes:
            continue
        if batch >= 2 and (batch // bb) < 2:
            continue                            # keep work for both v7x TCs
        best = bb
    return best


# ----------------------------------------------------------------------------
# Wrapper
# ----------------------------------------------------------------------------
def base_model_forward(images, weight, bias, final_activation=None, *,
                       max_tile_hw=65536):
    """Pallas equivalent of BaseModel.forward with net = Conv2d(Cin, Cout, 1).

    images: (B, Cin, H, W)  float32 or bfloat16 (NCHW, PyTorch convention)
    weight: (Cout, Cin)     1x1 conv kernel (squeezed)
    bias:   (Cout,)
    returns (B, Cout, H, W) in images.dtype
    """
    assert final_activation in ("softmax", "sigmoid", None)
    B, Cin, H, W = images.shape
    Cout = weight.shape[0]
    HW = H * W

    # Keep NCHW; flatten spatial so it lands on the lane axis (no transpose pass).
    x = images.reshape(B, Cin, HW)
    w = weight.astype(images.dtype)            # feed MXU natively, f32-accumulate
    b2 = bias.astype(jnp.float32).reshape(Cout, 1)

    itemsize = x.dtype.itemsize
    phys = _physical_vmem_bytes()
    # Blocks + intermediates sizing target (~32 MiB, or half of physical VMEM).
    budget = min(32 * 1024 * 1024, phys // 2)
    # Per-lane bytes: double-buffered in/out blocks + in-kernel f32 temporaries
    # (y, e, softmax reductions) that live alongside them.
    per_lane = (2 * Cin * itemsize) + (2 * Cout * itemsize) + (3 * Cout * 4)

    tile_hw = _pick_tile_hw(HW, B, per_lane, budget, max_tile_hw)
    n_hw = _cdiv(HW, tile_hw)
    bb = _pick_batch_block(B, n_hw, HW * per_lane, budget)
    n_b = B // bb

    # Scoped-VMEM allowance: generous but generation-safe (headroom on v7x's
    # 64 MiB; explicitly above v5e's 16 MiB default).
    vmem_limit = int(min(max(phys - 8 * 1024 * 1024, 32 * 1024 * 1024),
                         64 * 1024 * 1024))

    kernel = functools.partial(_base_model_kernel,
                               final_activation=final_activation,
                               batch_block=bb)

    out = pl.pallas_call(
        kernel,
        out_shape=jax.ShapeDtypeStruct((B, Cout, HW), images.dtype),
        grid_spec=pltpu.PrefetchScalarGridSpec(
            num_scalar_prefetch=0,
            grid=(n_b, n_hw),
            in_specs=[
                pl.BlockSpec((bb, Cin, tile_hw), lambda i, j: (i, 0, j)),
                pl.BlockSpec((Cout, Cin), lambda i, j: (0, 0)),
                pl.BlockSpec((Cout, 1), lambda i, j: (0, 0)),
            ],
            out_specs=pl.BlockSpec((bb, Cout, tile_hw), lambda i, j: (i, 0, j)),
        ),
        compiler_params=pltpu.CompilerParams(
            dimension_semantics=("parallel", "parallel"),   # v7x: 2 TCs shard here
            vmem_limit_bytes=vmem_limit),
    )(x, w, b2)

    return out.reshape(B, Cout, H, W)


# ----------------------------------------------------------------------------
# Self-test
# ----------------------------------------------------------------------------
if __name__ == "__main__":
    key = jax.random.PRNGKey(0)
    k_img, k_w, k_b = jax.random.split(key, 3)

    B, Cin, H, W = 2, 4, 16, 16
    Cout = 8

    images = jax.random.normal(k_img, (B, Cin, H, W), dtype=jnp.float32)
    weight = jax.random.normal(k_w, (Cout, Cin), dtype=jnp.float32) * 0.1
    bias = jax.random.normal(k_b, (Cout,), dtype=jnp.float32) * 0.01

    # plain-JAX reference of the same forward pass (1x1 conv + activation dim=1)
    logits = jnp.einsum("oc,bchw->bohw", weight, images) + bias[None, :, None, None]

    # softmax branch of BaseModel.forward (exact normalization now)
    y = jax.block_until_ready(
        base_model_forward(images, weight, bias, final_activation="softmax"))
    ref = jax.nn.softmax(logits, axis=1)
    assert y.shape == (B, Cout, H, W)
    assert jnp.allclose(y, ref, atol=1e-5, rtol=1e-5)
    assert jnp.allclose(jnp.sum(y, axis=1), 1.0, atol=1e-5)

    # sigmoid branch
    y_sig = jax.block_until_ready(
        base_model_forward(images, weight, bias, final_activation="sigmoid"))
    assert y_sig.shape == (B, Cout, H, W)
    assert jnp.allclose(y_sig, jax.nn.sigmoid(logits), atol=1e-5, rtol=1e-5)

    # identity branch
    y_id = jax.block_until_ready(
        base_model_forward(images, weight, bias, final_activation=None))
    assert y_id.shape == (B, Cout, H, W)
    assert jnp.allclose(y_id, logits, atol=1e-5, rtol=1e-5)

    # B==1 path: forces a spatial split (>=2 grid steps) + ragged last block,
    # and odd channel counts (full-extent block dims).
    B1, Cin1, H1, W1, Cout1 = 1, 3, 20, 20, 5
    img1 = jax.random.normal(k_img, (B1, Cin1, H1, W1), dtype=jnp.float32)
    w1 = jax.random.normal(k_w, (Cout1, Cin1), dtype=jnp.float32) * 0.1
    b1 = jax.random.normal(k_b, (Cout1,), dtype=jnp.float32) * 0.01
    logits1 = jnp.einsum("oc,bchw->bohw", w1, img1) + b1[None, :, None, None]
    y1 = jax.block_until_ready(
        base_model_forward(img1, w1, b1, final_activation="sigmoid"))
    assert y1.shape == (B1, Cout1, H1, W1)
    assert jnp.allclose(y1, jax.nn.sigmoid(logits1), atol=1e-5, rtol=1e-5)

    # small-HW / large-B path: batch-blocking (several images per grid step)
    B2, H2, W2 = 8, 8, 8
    img2 = jax.random.normal(k_img, (B2, Cin, H2, W2), dtype=jnp.float32)
    logits2 = jnp.einsum("oc,bchw->bohw", weight, img2) + bias[None, :, None, None]
    y2 = jax.block_until_ready(
        base_model_forward(img2, weight, bias, final_activation=None))
    assert y2.shape == (B2, Cout, H2, W2)
    assert jnp.allclose(y2, logits2, atol=1e-5, rtol=1e-5)

    # bf16 I/O path (halves HBM traffic for this memory-bound kernel);
    # bf16 fed straight to the MXU, f32 accumulation + f32 softmax math.
    y_bf16 = jax.block_until_ready(
        base_model_forward(images.astype(jnp.bfloat16), weight, bias,
                           final_activation="softmax"))
    assert y_bf16.dtype == jnp.bfloat16 and y_bf16.shape == (B, Cout, H, W)
    assert jnp.allclose(jnp.sum(y_bf16.astype(jnp.float32), axis=1), 1.0,
                        atol=2e-2)

    print("KERNEL_OK")
</pallas_src>

<mosaic_0001>
module attributes {stable_mosaic.version = 11 : i64} {
  func.func @_base_model_kernel(%arg0: i32, %arg1: i32, %arg2: memref<1x4x256xf32, #tpu.memory_space<vmem>>, %arg3: memref<8x4xf32, #tpu.memory_space<vmem>>, %arg4: memref<8x1xf32, #tpu.memory_space<vmem>>, %arg5: memref<1x8x256xf32, #tpu.memory_space<vmem>>) attributes {dimension_semantics = [#tpu.dimension_semantics<parallel>, #tpu.dimension_semantics<parallel>], iteration_bounds = array<i64: 2, 1>, scalar_prefetch = 0 : i64, scratch_operands = 0 : i64, tpu.core_type = #tpu.core_type<tc>, window_params = [{transform_indices = @transform_0, window_bounds = array<i64: 1, 4, 256>}, {pipeline_mode = #tpu.pipeline_mode<synchronous>, transform_indices = @transform_1, window_bounds = array<i64: 8, 4>}, {pipeline_mode = #tpu.pipeline_mode<synchronous>, transform_indices = @transform_2, window_bounds = array<i64: 8, 1>}, {transform_indices = @transform_3, window_bounds = array<i64: 1, 8, 256>}]} {
    %c0 = arith.constant 0 : index
    %c0_0 = arith.constant 0 : index
    %0 = vector.load %arg3[%c0, %c0_0] : memref<8x4xf32, #tpu.memory_space<vmem>>, vector<8x4xf32>
    %c0_1 = arith.constant 0 : index
    %c0_2 = arith.constant 0 : index
    %1 = vector.load %arg4[%c0_1, %c0_2] : memref<8x1xf32, #tpu.memory_space<vmem>>, vector<8x1xf32>
    %c0_3 = arith.constant 0 : index
    %c0_4 = arith.constant 0 : index
    %c0_5 = arith.constant 0 : index
    %2 = vector.load %arg2[%c0_3, %c0_4, %c0_5] : memref<1x4x256xf32, #tpu.memory_space<vmem>>, vector<1x4x256xf32>
    %3 = vector.shape_cast %2 : vector<1x4x256xf32> to vector<4x256xf32>
    %cst = arith.constant dense<0.000000e+00> : vector<8x256xf32>
    %4 = tpu.matmul %0, %3, %cst {dimension_numbers = #tpu.dot_dimension_numbers<[1], [0], [0], [1], [0, 0, 1, 1], [], []>} : vector<8x4xf32>, vector<4x256xf32>, vector<8x256xf32> -> vector<8x256xf32>
    %5 = vector.broadcast %1 : vector<8x1xf32> to vector<8x256xf32>
    %6 = arith.addf %4, %5 : vector<8x256xf32>
    %cst_6 = arith.constant dense<0xFF800000> : vector<256xf32>
    %7 = vector.multi_reduction <maximumf>, %6, %cst_6 [0] : vector<8x256xf32> to vector<256xf32>
    %8 = vector.shape_cast %7 : vector<256xf32> to vector<1x256xf32>
    %9 = vector.broadcast %8 : vector<1x256xf32> to vector<8x256xf32>
    %10 = arith.subf %6, %9 : vector<8x256xf32>
    %11 = math.exp %10 : vector<8x256xf32>
    %cst_7 = arith.constant dense<0.000000e+00> : vector<256xf32>
    %12 = vector.multi_reduction <add>, %11, %cst_7 [0] : vector<8x256xf32> to vector<256xf32>
    %13 = vector.shape_cast %12 : vector<256xf32> to vector<1x256xf32>
    %14 = vector.broadcast %13 : vector<1x256xf32> to vector<8x256xf32>
    %15 = arith.divf %11, %14 : vector<8x256xf32>
    %c0_8 = arith.constant 0 : index
    %c0_9 = arith.constant 0 : index
    %c0_10 = arith.constant 0 : index
    %16 = vector.load %arg5[%c0_8, %c0_9, %c0_10] : memref<1x8x256xf32, #tpu.memory_space<vmem>>, vector<1x8x256xf32>
    %17 = vector.shape_cast %16 : vector<1x8x256xf32> to vector<8x256xf32>
    %18 = vector.shape_cast %15 : vector<8x256xf32> to vector<1x8x256xf32>
    tpu.vector_store %arg5[%c0_8, %c0_9, %c0_10], %18 {strides = array<i32>} : memref<1x8x256xf32, #tpu.memory_space<vmem>>, vector<1x8x256xf32>,
    return
  }
  func.func @transform_0(%arg0: i32, %arg1: i32) -> (i32, i32, i32) {
    %c0_i32 = arith.constant 0 : i32
    %c0_i32_0 = arith.constant 0 : i32
    return %arg0, %c0_i32, %arg1 : i32, i32, i32
  }
  func.func @transform_1(%arg0: i32, %arg1: i32) -> (i32, i32) {
    %c0_i32 = arith.constant 0 : i32
    %c0_i32_0 = arith.constant 0 : i32
    %c0_i32_1 = arith.constant 0 : i32
    return %c0_i32, %c0_i32_0 : i32, i32
  }
  func.func @transform_2(%arg0: i32, %arg1: i32) -> (i32, i32) {
    %c0_i32 = arith.constant 0 : i32
    %c0_i32_0 = arith.constant 0 : i32
    %c0_i32_1 = arith.constant 0 : i32
    return %c0_i32, %c0_i32_0 : i32, i32
  }
  func.func @transform_3(%arg0: i32, %arg1: i32) -> (i32, i32, i32) {
    %c0_i32 = arith.constant 0 : i32
    %c0_i32_0 = arith.constant 0 : i32
    return %arg0, %c0_i32, %arg1 : i32, i32, i32
  }
}

</mosaic_0001>

<bundles_post_ra>
// kernel: tpu_custom_call.1
= control target key start
LH: loop header
LB: loop body
LE: loop exit
PB: predicated region body
PF: predicated region fallthrough
CT: control target
= control target key end

     0   :  { %8 = vsyncpa [#allocation3], 0  ;;  %s710_s0 = inlined_call_operand.vmem [shape: f32[2,4,256], index: 0, kind: input, shape index: {}]   ;;  %s711_s1 = inlined_call_operand.vmem [shape: f32[8,4], index: 1, kind: input, shape index: {}]   ;;  %s712_s2 = inlined_call_operand.vmem [shape: f32[8,1], index: 2, kind: input, shape index: {}]   ;;  %s713_s3 = inlined_call_operand.hbm [shape: f32[2,8,256], index: 3, kind: output, shape index: {}]  }
   0x1   :  { %10 = vsyncpa [#allocation3 + $0x1], 0  ;;  %s603_s12 = smov 0   ;;  %s605_s13 = smov 0  }
   0x2   :  { %s607_s14 = smov 0   ;;  %s609_s15 = smov 0  }
   0x3   :  { %s611_s16 = smov 0   ;;  %s613_s17 = smov 0  }
   0x4 LB: > { %s418_s18 = sadd.s32 4294967295, %s580_s17   ;;  %s419_s19 = sadd.s32 4294967294, %s580_s17   ;;  %s580_s17 = sphi %s613_s17, %s16_s17   ;;  %s576_s16 = sphi %s611_s16, %s720_s16   ;;  %s572_s15 = sphi %s609_s15, %s719_s15   ;;  %s568_s14 = sphi %s607_s14, %s718_s14   ;;  %s564_s13 = sphi %s605_s13, %s717_s13   ;;  %s560_s12 = sphi %s603_s12, %s716_s12  }
   0x5   : > { %s28_s20 = sadd.s32 1, %s576_s16  ;;  %s107_s21 = sadd.s32 1, %s568_s14 }
   0x6   : > { %p30_p0 = scmp.ge.s32.totalorder %s28_s20, 2  ;;  %p117_p1 = scmp.ne.s32.totalorder %s568_s14, %s564_s13 }
   0x7   : > { %p118_p2 = scmp.eq.s32.totalorder %s418_s18, 1  ;;  %p123_p3 = scmp.ne.s32.totalorder %s564_s13, %s560_s12 }
   0x8   : > { %s722_s20 = smov (%p30_p0, %s28_s20), 0  ;;  %p124_p5 = scmp.eq.s32.totalorder %s419_s19, 1 }
   0x9   : > { %p643_p4 = por %p118_p2, %p117_p1  ;;  %s102_s23 = ssub.s32 %s576_s16, %s722_s20 }
   0xa   : > { %p422_p6 = scmp.ge.s32.totalorder %s580_s17, 1  ;;  %p105_p7 = scmp.eq.s32.totalorder %s102_s23, 0 }
   0xb   : > { %p650_p8 = por %p124_p5, %p123_p3  ;;  %p161_p9 = scmp.lt.s32.totalorder %s580_s17, 3 }
   0xc   : > { %s656_s25 = scalar_select %p105_p7, %s568_s14, %s107_s21  }
   0xd   : > { %p162_p10 = pnand %p422_p6, %p161_p9 }
   0xe   : > { %p190_p11 = scmp.lt.s32.totalorder (!%p162_p10), %s572_s15, 1  ;;  %s186_s8 = sand.u32 (!%p162_p10), 1, %s564_s13  }
   0xf   : > { %165 = sbr.rel (%p162_p10) target bundleno = 220 (0xdc), region = 32  ;;  %s423_s9 = sshll.u32 (!%p162_p10), %s186_s8, 4 }
  0x10   : > { %s436_s10 = sshll.u32 (!%p162_p10), %s572_s15, 4  ;;  %s324_s26 = scalar_lea.sflag (!%p162_p10), [#allocation3], %s186_s8 }
  0x11   : > { %s337_s19 = scalar_lea.hbm (!%p162_p10), %s713_s3, %s436_s10  ;;  %s522_s4 = scalar_lea.hbm (!%p162_p10), %s713_s3, 32 }
  0x12   : > { %s341_s23 = sshll.u32 (!%p162_p10), %s337_s19, 4  ;;  %s342_s23 = int_to_ptr.hbm [resolvable:$true] %s341_s23 }
  0x13   : > { %s516_s27 = sshra.s32 (!%p162_p10), %s342_s23, 4  ;;  %s517_s27 = int_to_ptr.hbm [resolvable:$true] %s516_s27 }
  0x14   : > { %v201_v0 = vld [vmem:[%s712_s2] sm:$0xff]  ;;  %v582_v1 = vmov 0   ;;  %s191_s28 = scalar_select %p190_p11, %s572_s15, 1  ;;  %vm216_vm0 = vcmask 1043456   ;;  %vm212_vm1 = vcmask 31744  }
  0x15   : > { %493 = vset.pattern.permute.xlu0 %v582_v1  ;;  %v200_v3 = vld [vmem:[%s711_s1] sm:$0xff]  ;;  %s188_s15 = scalar_lea.vmem [#allocation2], %s423_s9  ;;  %p523_p1 = scmp.lt.s32.totalorder %s517_s27, %s713_s3 }
  0x16   : > { %205 = vperm.xlu0 %493, %v201_v0   ;;  %s435_s29 = sshll.u32 %s191_s28, 3  ;;  %s339_s21 = sshll.u32 %s188_s15, 4  ;;  %s340_s21 = int_to_ptr.vmem [resolvable:$true] %s339_s21 }
  0x17   : > { %s197_s5 = scalar_lea.vmem %s710_s0, %s435_s29  ;;  %s518_s28 = scalar_lea.hbm %s517_s27, 16 }
  0x18   : > { %v202_v2 = vld [vmem:[%s197_s5] sm:$0xff]  ;;  %p519_p12 = scmp.ne.s32.totalorder %s517_s27, %s518_s28  ;;  %p524_p2 = scmp.lt.s32.totalorder %s522_s4, %s518_s28 }
  0x19   : > { %209 = vst [vmem:[#allocation1] ss:$2 sm:$0xff] %v202_v2 }
  0x1a   : > { %p520_p13 = pnand %p519_p12, %p643_p4  ;;  %p525_p3 = por %p524_p2, %p523_p1 }
  0x1c   : > { %p521_p0 = pneg %p520_p13 }
  0x1e   : > { %p526_p5 = pnand %p525_p3, %p521_p0 }
  0x20   : > { %v210_v4 = vld.sshfl [vmem:[#allocation1] sm:$0xff pattern:$0x75316420]  ;;  %v211_v5 = vld.sshfl [vmem:[#allocation1 + $0x8] sm:$0xff pattern:$0x75316420] }
  0x21   : > { %426 = vmatpush.msk.msra.mxu0 %vm216_vm0, %v210_v4  ;;  %428 = vmatpush.msk.msra.mxu1 %vm216_vm0, %v211_v5 }
  0x22   : > { %427 = vmatmul.msk.f32.vlgmr.msra.gmra.mxu0 %vm212_vm1, %v200_v3  ;;  %429 = vmatmul.msk.f32.vlgmr.msra.gmra.mxu1 %vm212_vm1, %v200_v3 }
  0x88   : > { %v206_v6 = vpop.permute.xlu0 %205 }
  0x9f   : > { %v238_v7 = vpop.f32.mrf.mxu0  ;;  %v258_v8 = vpop.f32.mrf.mxu1 }
  0xa0   : > { %v239_v9 = vadd.f32 %v238_v7, %v206_v6  ;;  %v259_v10 = vadd.f32 %v258_v8, %v206_v6 }
  0xa2   : > { %v261_v11 = vrot.slane %v239_v9, 4  ;;  %v267_v12 = vrot.slane %v259_v10, 4 }
  0xa4   : > { %v262_v13 = vmax.f32 %v239_v9, %v261_v11  ;;  %v268_v14 = vmax.f32 %v259_v10, %v267_v12 }
  0xa6   : > { %v263_v15 = vrot.slane %v262_v13, 2  ;;  %v269_v16 = vrot.slane %v268_v14, 2 }
  0xa8   : > { %v264_v17 = vmax.f32 %v262_v13, %v263_v15  ;;  %v270_v18 = vmax.f32 %v268_v14, %v269_v16 }
  0xaa   : > { %v265_v19 = vrot.slane %v264_v17, 1  ;;  %v271_v20 = vrot.slane %v270_v18, 1 }
  0xac   : > { %v266_v21 = vmax.f32 %v264_v17, %v265_v19  ;;  %v272_v22 = vmax.f32 %v270_v18, %v271_v20 }
  0xae   : > { %v273_v23 = vsub.f32 %v239_v9, %v266_v21  ;;  %v274_v24 = vsub.f32 %v259_v10, %v272_v22 }
  0xb0   : > { %v275_v25 = vmul.f32 1.442695, %v273_v23  ;;  %v277_v26 = vmul.f32 1.442695, %v274_v24 }
  0xb2   : > { %494 = vpow2.f32 %v275_v25 }
  0xb3   : > { %496 = vpow2.f32 %v277_v26 }
  0xb8   : > { %v495_v27 = vpop.eup %494 }
  0xb9   : > { %v497_v28 = vpop.eup %496  ;;  %v279_v29 = vrot.slane %v495_v27, 4 }
  0xba   : > { %v285_v30 = vrot.slane %v497_v28, 4 }
  0xbb   : > { %v280_v31 = vadd.f32 %v495_v27, %v279_v29 }
  0xbc   : > { %v286_v32 = vadd.f32 %v497_v28, %v285_v30 }
  0xbd   : > { %v281_v33 = vrot.slane %v280_v31, 2 }
  0xbe   : > { %v287_v34 = vrot.slane %v286_v32, 2 }
  0xbf   : > { %v282_v35 = vadd.f32 %v281_v33, %v280_v31 }
  0xc0   : > { %v288_v36 = vadd.f32 %v287_v34, %v286_v32 }
  0xc1   : > { %v283_v37 = vrot.slane %v282_v35, 1 }
  0xc2   : > { %v289_v38 = vrot.slane %v288_v36, 1 }
  0xc3   : > { %v284_v39 = vadd.f32 %v283_v37, %v282_v35 }
  0xc4   : > { %v290_v40 = vadd.f32 %v289_v38, %v288_v36 }
  0xc5   : > { %498 = vrcp.f32 %v284_v39  ;;  %v302_v46 = vand.u32 2147483648, %v284_v39  ;;  %v300_v49 = vand.u32 2147483647, %v284_v39  ;;  %vm296_vm4 = vweird.f32 %v284_v39 }
  0xc6   : > { %500 = vrcp.f32 %v290_v40  ;;  %v317_v50 = vand.u32 2147483648, %v290_v40  ;;  %v315_v52 = vand.u32 2147483647, %v290_v40  ;;  %vm311_vm6 = vweird.f32 %v290_v40 }
  0xc7   : > { %v303_v54 = vor.u32 1.1754944e-38, %v302_v46  ;;  %vm301_vm7 = vcmp.eq.f32.partialorder %v300_v49, 8.507059e+37 }
  0xc8   : > { %v318_v57 = vor.u32 1.1754944e-38, %v317_v50  ;;  %vm316_vm9 = vcmp.eq.f32.partialorder %v315_v52, 8.507059e+37 }
  0xcb   : > { %v499_v41 = vpop.eup %498 }
  0xcc   : > { %v501_v42 = vpop.eup %500  ;;  %v292_v43 = vmul.f32 %v499_v41, %v284_v39  ;;  %vm297_vm2 = vweird.f32 %v499_v41 }
  0xcd   : > { %v307_v44 = vmul.f32 %v501_v42, %v290_v40  ;;  %vm312_vm3 = vweird.f32 %v501_v42  ;;  %vm298_vm5 = vmor %vm296_vm4, %vm297_vm2 }
  0xce   : > { %v293_v45 = vsub.f32 1.0, %v292_v43  ;;  %vm313_vm8 = vmor %vm311_vm6, %vm312_vm3 }
  0xcf   : > { %v308_v47 = vsub.f32 1.0, %v307_v44 }
  0xd0   : > { %v294_v48 = vmul.f32 %v499_v41, %v293_v45 }
  0xd1   : > { %v309_v51 = vmul.f32 %v501_v42, %v308_v47 }
  0xd2   : > { %v295_v53 = vadd.f32 %v499_v41, %v294_v48 }
  0xd3   : > { %v310_v55 = vadd.f32 %v501_v42, %v309_v51 }
  0xd4   : > { %v299_v56 = vsel %vm298_vm5, %v499_v41, %v295_v53 }
  0xd5   : > { %v304_v58 = vsel %vm301_vm7, %v303_v54, %v299_v56  ;;  %v314_v59 = vsel %vm313_vm8, %v501_v42, %v310_v55 }
  0xd6   : > { %v305_v60 = vmul.f32 %v495_v27, %v304_v58  ;;  %v319_v61 = vsel %vm316_vm9, %v318_v57, %v314_v59 }
  0xd7   : > { %v320_v62 = vmul.f32 %v497_v28, %v319_v61 }
  0xd8   : > { %321 = vst [vmem:[%s188_s15] sm:$0xff] %v305_v60 }
  0xd9   : > { %322 = vst [vmem:[%s188_s15 + $0x8] sm:$0xff] %v320_v62 }
  0xda   : > { %529 = shalt.err (!%p526_p5)
}
  0xdb   : > { %437 = dma.vmem_to_hbm [thread:$0]  (%p643_p4), %s340_s21, 256, %s342_s23, %s324_s26  }
  0xdc PF: > { %p443_p6 = scmp.ge.s32.totalorder %s580_s17, 2  ;;  %s353_s7 = sand.u32 1, %s560_s12  }
  0xdd   : > { %s354_s8 = scalar_lea.sflag [#allocation3], %s353_s7 }
  0xde   : > { %p440_p7 = pnand %p443_p6, %p650_p8 }
  0xe0   : > { %p441_p9 = pneg %p440_p7 }
  0xe2   : > { %555 = dma.done.wait (%p441_p9), %s354_s8, 256  }
  0xe3   : > { %557 = vsyncadd (%p441_p9), %s354_s8, 4294967040  ;;  %s16_s17 = sadd.s32 1, %s580_s17   ;;  %s716_s12 = smov %s564_s13 }
  0xe4   : > { %p13_p10 = scmp.ge.s32.totalorder %s16_s17, 4   ;;  %s717_s13 = smov %s568_s14 }
  0xe5   : > { %s718_s14 = smov %s656_s25  ;;  %s719_s15 = smov %s576_s16 }
  0xe6   : > { %s720_s16 = smov %s722_s20  ;;  %15 = sbr.rel (!%p13_p10) target bundleno = 4 (0x4), region = 67 }
  0xeb   :  { %360 = vsyncpa [#allocation3], 1 }
  0xec   :  { %362 = vsyncpa [#allocation3 + $0x1], 1 }

</bundles_post_ra>
